<compile_context>
chip_gen: v7x
topology: tpu7x:2x2x1
jax: 0.10.0
libtpu: 0.0.40
codegen_flags: <defaults>
</compile_context>

<pallas_src>
import functools

import jax
import jax.numpy as jnp
from jax.experimental import pallas as pl
from jax.experimental.pallas import tpu as pltpu


def decoder_kernel(x_ref, c_ref, w_g_ref, b_g_ref, w_o_ref, b_o_ref,
                   prob_ref, h_out_ref, c_out_ref, h_scr):
    """One grid step = one vocab tile of the output projection.

    Step 0 additionally runs the LSTM cell and stashes h'/c'.
    """
    H = c_ref.shape[-1]

    @pl.when(pl.program_id(0) == 0)
    def _lstm_cell():
        # Fused gate GEMM: (B, E+H) @ (E+H, 4H) -> (B, 4H), f32 accumulation.
        gates = (
            jnp.dot(x_ref[...], w_g_ref[...], preferred_element_type=jnp.float32)
            + b_g_ref[...]
        )
        # PyTorch LSTMCell gate order: input, forget, cell (g), output.
        # H is a multiple of 128 in real configs -> lane-aligned slices.
        i_g = jax.nn.sigmoid(gates[:, 0 * H:1 * H])
        f_g = jax.nn.sigmoid(gates[:, 1 * H:2 * H])
        g_g = jnp.tanh(gates[:, 2 * H:3 * H])
        o_g = jax.nn.sigmoid(gates[:, 3 * H:4 * H])

        c_new = f_g * c_ref[...] + i_g * g_g          # f32 elementwise
        h_new = o_g * jnp.tanh(c_new)

        h_scr[...] = h_new                            # keep f32 copy for projection
        h_out_ref[...] = h_new.astype(h_out_ref.dtype)
        c_out_ref[...] = c_new.astype(c_out_ref.dtype)

    # Output projection for this vocab tile: (B, H) @ (H, TV) -> (B, TV).
    h_p = h_scr[...].astype(w_o_ref.dtype)
    prob = (
        jnp.dot(h_p, w_o_ref[...], preferred_element_type=jnp.float32)
        + b_o_ref[...]
    )
    prob_ref[...] = prob.astype(prob_ref.dtype)


def prepare_decoder_params(w_ih, w_hh, b_ih, b_hh, w_out, b_out,
                           param_dtype=jnp.float32):
    """One-time (model-load-time) parameter prep.

    - Transposes weights to feature-last matmul layout.
    - Stacks [W_ih; W_hh] so the kernel does a single fused gate GEMM.
    - Folds b_ih + b_hh.
    - Optionally casts weights to bf16 (MXU-native on v6e/v7x, halves HBM
      traffic for the projection); biases stay f32.
    """
    w_gates = jnp.concatenate([w_ih.T, w_hh.T], axis=0).astype(param_dtype)  # (E+H, 4H)
    b_gates = (b_ih + b_hh).reshape(1, -1).astype(jnp.float32)               # (1, 4H)
    w_o = w_out.T.astype(param_dtype)                                        # (H, V)
    b_o = b_out.reshape(1, -1).astype(jnp.float32)                           # (1, V)
    return w_gates, b_gates, w_o, b_o


def _pick_vocab_tile(V, H, itemsize, vmem_budget_bytes=8 * 1024 * 1024):
    """Largest 128-multiple tile such that the double-buffered w_out tiles fit
    comfortably in the default scoped-VMEM limit (tightest default: 16 MiB on
    v5e; v7x has only 64 MiB physical per TensorCore)."""
    tv = (vmem_budget_bytes // (2 * H * itemsize)) // 128 * 128
    tv = max(128, tv)
    return min(tv, V)


@functools.partial(jax.jit, static_argnames=("tv",))
def decoder_forward(src, h, c, params, tv=None):
    """prob, (h', c') = Decoder(src, (h, c)) with pre-prepared params."""
    w_gates, b_gates, w_o, b_o = params
    B, E = src.shape
    H = h.shape[-1]
    V = w_o.shape[-1]

    if tv is None:
        tv = _pick_vocab_tile(V, H, jnp.dtype(w_o.dtype).itemsize)
    tv = min(tv, V)
    grid = (pl.cdiv(V, tv),)

    # Concatenate [src, h] for the fused gate GEMM; cast activations to the
    # weight dtype so bf16 weights take the bf16 MXU path.
    x = jnp.concatenate([src, h], axis=1).astype(w_gates.dtype)   # (B, E+H)
    c = c.astype(jnp.float32)

    const = lambda shape: pl.BlockSpec(shape, lambda j: tuple(0 for _ in shape))

    prob, h_new, c_new = pl.pallas_call(
        decoder_kernel,
        out_shape=(
            jax.ShapeDtypeStruct((B, V), jnp.float32),
            jax.ShapeDtypeStruct((B, H), jnp.float32),
            jax.ShapeDtypeStruct((B, H), jnp.float32),
        ),
        grid_spec=pltpu.PrefetchScalarGridSpec(
            num_scalar_prefetch=0,
            grid=grid,
            in_specs=[
                const((B, E + H)),                                 # x (resident)
                const((B, H)),                                     # c (resident)
                const((E + H, 4 * H)),                             # W_gates (resident)
                const((1, 4 * H)),                                 # b_gates (resident)
                pl.BlockSpec((H, tv), lambda j: (0, j)),           # W_out tile (streamed)
                pl.BlockSpec((1, tv), lambda j: (0, j)),           # b_out tile (streamed)
            ],
            out_specs=(
                pl.BlockSpec((B, tv), lambda j: (0, j)),           # prob tile
                const((B, H)),                                     # h'
                const((B, H)),                                     # c'
            ),
            scratch_shapes=[pltpu.VMEM((B, H), jnp.float32)],      # f32 h' carried
        ),
        # The vocab grid axis carries the h'/c' scratch computed on step 0, so
        # it must be "arbitrary" (sequential), not "parallel".
        compiler_params=pltpu.CompilerParams(
            dimension_semantics=("arbitrary",),
        ),
    )(x, c, w_gates, b_gates, w_o, b_o)

    return prob, (h_new, c_new)


def _reference(src, h, c, w_ih, w_hh, b_ih, b_hh, w_out, b_out):
    """Pure-JAX reference mirroring torch.nn.LSTMCell + Linear."""
    H = h.shape[-1]
    gates = src @ w_ih.T + b_ih + h @ w_hh.T + b_hh
    i_g = jax.nn.sigmoid(gates[:, 0 * H:1 * H])
    f_g = jax.nn.sigmoid(gates[:, 1 * H:2 * H])
    g_g = jnp.tanh(gates[:, 2 * H:3 * H])
    o_g = jax.nn.sigmoid(gates[:, 3 * H:4 * H])
    c_new = f_g * c + i_g * g_g
    h_new = o_g * jnp.tanh(c_new)
    prob = h_new @ w_out.T + b_out
    return prob, (h_new, c_new)


if __name__ == "__main__":
    # Small but TPU-friendly shapes: B multiple of 8, H and V multiples of 128.
    B, E, H, V = 8, 32, 128, 256

    key = jax.random.PRNGKey(0)
    ks = jax.random.split(key, 9)

    s = 1.0 / jnp.sqrt(H)
    src = jax.random.normal(ks[0], (B, E), jnp.float32)
    h0 = jax.random.normal(ks[1], (B, H), jnp.float32)
    c0 = jax.random.normal(ks[2], (B, H), jnp.float32)
    w_ih = jax.random.uniform(ks[3], (4 * H, E), jnp.float32, -s, s)
    w_hh = jax.random.uniform(ks[4], (4 * H, H), jnp.float32, -s, s)
    b_ih = jax.random.uniform(ks[5], (4 * H,), jnp.float32, -s, s)
    b_hh = jax.random.uniform(ks[6], (4 * H,), jnp.float32, -s, s)
    w_out = jax.random.uniform(ks[7], (V, H), jnp.float32, -s, s)
    b_out = jax.random.uniform(ks[8], (V,), jnp.float32, -s, s)

    prob_ref, (h_ref, c_ref) = _reference(src, h0, c0, w_ih, w_hh, b_ih, b_hh,
                                          w_out, b_out)

    # --- f32 path (exercise a 2-step vocab grid with TV=128) ---------------
    params_f32 = prepare_decoder_params(w_ih, w_hh, b_ih, b_hh, w_out, b_out,
                                        param_dtype=jnp.float32)
    prob, (h1, c1) = decoder_forward(src, h0, c0, params_f32, tv=128)
    jax.block_until_ready((prob, h1, c1))

    assert jnp.allclose(prob, prob_ref, atol=1e-4, rtol=1e-4)
    assert jnp.allclose(h1, h_ref, atol=1e-4, rtol=1e-4)
    assert jnp.allclose(c1, c_ref, atol=1e-4, rtol=1e-4)

    # --- bf16-weight path (halves HBM traffic on the projection) -----------
    params_bf16 = prepare_decoder_params(w_ih, w_hh, b_ih, b_hh, w_out, b_out,
                                         param_dtype=jnp.bfloat16)
    prob_b, (h1_b, c1_b) = decoder_forward(src, h0, c0, params_bf16, tv=128)
    jax.block_until_ready((prob_b, h1_b, c1_b))

    assert jnp.allclose(prob_b, prob_ref, atol=5e-2, rtol=5e-2)
    assert jnp.allclose(h1_b, h_ref, atol=5e-2, rtol=5e-2)
    assert jnp.allclose(c1_b, c_ref, atol=5e-2, rtol=5e-2)

    # TODO(synk): for autoregressive decoding, move the time loop inside the
    # kernel (time grid axis / manual HBM refs) so W_gates stays VMEM-resident
    # across steps instead of being re-fetched per pallas_call.
    print("KERNEL_OK")
</pallas_src>

<mosaic_0001>
module attributes {stable_mosaic.version = 11 : i64} {
  func.func @decoder_kernel(%arg0: i32, %arg1: memref<8x160xf32, #tpu.memory_space<vmem>>, %arg2: memref<8x128xf32, #tpu.memory_space<vmem>>, %arg3: memref<160x512xf32, #tpu.memory_space<vmem>>, %arg4: memref<1x512xf32, #tpu.memory_space<vmem>>, %arg5: memref<128x128xf32, #tpu.memory_space<vmem>>, %arg6: memref<1x128xf32, #tpu.memory_space<vmem>>, %arg7: memref<8x128xf32, #tpu.memory_space<vmem>>, %arg8: memref<8x128xf32, #tpu.memory_space<vmem>>, %arg9: memref<8x128xf32, #tpu.memory_space<vmem>>, %arg10: memref<8x128xf32, #tpu.memory_space<vmem>>) attributes {dimension_semantics = [#tpu.dimension_semantics<arbitrary>], iteration_bounds = array<i64: 2>, scalar_prefetch = 0 : i64, scratch_operands = 1 : i64, tpu.core_type = #tpu.core_type<tc>, window_params = [{pipeline_mode = #tpu.pipeline_mode<synchronous>, transform_indices = @transform_0, window_bounds = array<i64: 8, 160>}, {pipeline_mode = #tpu.pipeline_mode<synchronous>, transform_indices = @transform_1, window_bounds = array<i64: 8, 128>}, {pipeline_mode = #tpu.pipeline_mode<synchronous>, transform_indices = @transform_2, window_bounds = array<i64: 160, 512>}, {pipeline_mode = #tpu.pipeline_mode<synchronous>, transform_indices = @transform_3, window_bounds = array<i64: 1, 512>}, {transform_indices = @transform_4, window_bounds = array<i64: 128, 128>}, {transform_indices = @transform_5, window_bounds = array<i64: 1, 128>}, {transform_indices = @transform_6, window_bounds = array<i64: 8, 128>}, {pipeline_mode = #tpu.pipeline_mode<synchronous>, transform_indices = @transform_7, window_bounds = array<i64: 8, 128>}, {pipeline_mode = #tpu.pipeline_mode<synchronous>, transform_indices = @transform_8, window_bounds = array<i64: 8, 128>}]} {
    %c0_i32 = arith.constant 0 : i32
    %0 = arith.cmpi eq, %arg0, %c0_i32 : i32
    %1 = arith.extui %0 : i1 to i32
    %c0_i32_0 = arith.constant 0 : i32
    %2 = arith.cmpi ne, %1, %c0_i32_0 : i32
    scf.if %2 {
      %c0_8 = arith.constant 0 : index
      %c0_9 = arith.constant 0 : index
      %10 = vector.load %arg1[%c0_8, %c0_9] : memref<8x160xf32, #tpu.memory_space<vmem>>, vector<8x160xf32>
      %c0_10 = arith.constant 0 : index
      %c0_11 = arith.constant 0 : index
      %11 = vector.load %arg3[%c0_10, %c0_11] : memref<160x512xf32, #tpu.memory_space<vmem>>, vector<160x512xf32>
      %cst_12 = arith.constant dense<0.000000e+00> : vector<8x512xf32>
      %12 = tpu.matmul %10, %11, %cst_12 {dimension_numbers = #tpu.dot_dimension_numbers<[1], [0], [0], [1], [0, 0, 1, 1], [], []>} : vector<8x160xf32>, vector<160x512xf32>, vector<8x512xf32> -> vector<8x512xf32>
      %c0_13 = arith.constant 0 : index
      %c0_14 = arith.constant 0 : index
      %13 = vector.load %arg4[%c0_13, %c0_14] : memref<1x512xf32, #tpu.memory_space<vmem>>, vector<1x512xf32>
      %14 = vector.broadcast %13 : vector<1x512xf32> to vector<8x512xf32>
      %15 = arith.addf %12, %14 : vector<8x512xf32>
      %16 = vector.extract_strided_slice %15 {offsets = [0, 0], sizes = [8, 128], strides = [1, 1]} : vector<8x512xf32> to vector<8x128xf32>
      %17 = arith.negf %16 : vector<8x128xf32>
      %18 = math.exp %17 : vector<8x128xf32>
      %cst_15 = arith.constant 1.000000e+00 : f32
      %19 = vector.broadcast %cst_15 : f32 to vector<8x128xf32>
      %20 = arith.addf %19, %18 : vector<8x128xf32>
      %21 = arith.divf %19, %20 : vector<8x128xf32>
      %22 = vector.extract_strided_slice %15 {offsets = [0, 128], sizes = [8, 128], strides = [1, 1]} : vector<8x512xf32> to vector<8x128xf32>
      %23 = arith.negf %22 : vector<8x128xf32>
      %24 = math.exp %23 : vector<8x128xf32>
      %cst_16 = arith.constant 1.000000e+00 : f32
      %25 = vector.broadcast %cst_16 : f32 to vector<8x128xf32>
      %26 = arith.addf %25, %24 : vector<8x128xf32>
      %27 = arith.divf %25, %26 : vector<8x128xf32>
      %28 = vector.extract_strided_slice %15 {offsets = [0, 256], sizes = [8, 128], strides = [1, 1]} : vector<8x512xf32> to vector<8x128xf32>
      %29 = math.tanh %28 : vector<8x128xf32>
      %30 = vector.extract_strided_slice %15 {offsets = [0, 384], sizes = [8, 128], strides = [1, 1]} : vector<8x512xf32> to vector<8x128xf32>
      %31 = arith.negf %30 : vector<8x128xf32>
      %32 = math.exp %31 : vector<8x128xf32>
      %cst_17 = arith.constant 1.000000e+00 : f32
      %33 = vector.broadcast %cst_17 : f32 to vector<8x128xf32>
      %34 = arith.addf %33, %32 : vector<8x128xf32>
      %35 = arith.divf %33, %34 : vector<8x128xf32>
      %c0_18 = arith.constant 0 : index
      %c0_19 = arith.constant 0 : index
      %36 = vector.load %arg2[%c0_18, %c0_19] : memref<8x128xf32, #tpu.memory_space<vmem>>, vector<8x128xf32>
      %37 = arith.mulf %27, %36 : vector<8x128xf32>
      %38 = arith.mulf %21, %29 : vector<8x128xf32>
      %39 = arith.addf %37, %38 : vector<8x128xf32>
      %40 = math.tanh %39 : vector<8x128xf32>
      %41 = arith.mulf %35, %40 : vector<8x128xf32>
      %c0_20 = arith.constant 0 : index
      %c0_21 = arith.constant 0 : index
      %42 = vector.load %arg10[%c0_20, %c0_21] : memref<8x128xf32, #tpu.memory_space<vmem>>, vector<8x128xf32>
      tpu.vector_store %arg10[%c0_20, %c0_21], %41 {strides = array<i32>} : memref<8x128xf32, #tpu.memory_space<vmem>>, vector<8x128xf32>,
      %c0_22 = arith.constant 0 : index
      %c0_23 = arith.constant 0 : index
      %43 = vector.load %arg8[%c0_22, %c0_23] : memref<8x128xf32, #tpu.memory_space<vmem>>, vector<8x128xf32>
      tpu.vector_store %arg8[%c0_22, %c0_23], %41 {strides = array<i32>} : memref<8x128xf32, #tpu.memory_space<vmem>>, vector<8x128xf32>,
      %c0_24 = arith.constant 0 : index
      %c0_25 = arith.constant 0 : index
      %44 = vector.load %arg9[%c0_24, %c0_25] : memref<8x128xf32, #tpu.memory_space<vmem>>, vector<8x128xf32>
      tpu.vector_store %arg9[%c0_24, %c0_25], %39 {strides = array<i32>} : memref<8x128xf32, #tpu.memory_space<vmem>>, vector<8x128xf32>,
    } else {
    }
    %c0 = arith.constant 0 : index
    %c0_1 = arith.constant 0 : index
    %3 = vector.load %arg10[%c0, %c0_1] : memref<8x128xf32, #tpu.memory_space<vmem>>, vector<8x128xf32>
    %c0_2 = arith.constant 0 : index
    %c0_3 = arith.constant 0 : index
    %4 = vector.load %arg5[%c0_2, %c0_3] : memref<128x128xf32, #tpu.memory_space<vmem>>, vector<128x128xf32>
    %cst = arith.constant dense<0.000000e+00> : vector<8x128xf32>
    %5 = tpu.matmul %3, %4, %cst {dimension_numbers = #tpu.dot_dimension_numbers<[1], [0], [0], [1], [0, 0, 1, 1], [], []>} : vector<8x128xf32>, vector<128x128xf32>, vector<8x128xf32> -> vector<8x128xf32>
    %c0_4 = arith.constant 0 : index
    %c0_5 = arith.constant 0 : index
    %6 = vector.load %arg6[%c0_4, %c0_5] : memref<1x128xf32, #tpu.memory_space<vmem>>, vector<1x128xf32>
    %7 = vector.broadcast %6 : vector<1x128xf32> to vector<8x128xf32>
    %8 = arith.addf %5, %7 : vector<8x128xf32>
    %c0_6 = arith.constant 0 : index
    %c0_7 = arith.constant 0 : index
    %9 = vector.load %arg7[%c0_6, %c0_7] : memref<8x128xf32, #tpu.memory_space<vmem>>, vector<8x128xf32>
    tpu.vector_store %arg7[%c0_6, %c0_7], %8 {strides = array<i32>} : memref<8x128xf32, #tpu.memory_space<vmem>>, vector<8x128xf32>,
    return
  }
  func.func @transform_0(%arg0: i32) -> (i32, i32) {
    %c0_i32 = arith.constant 0 : i32
    %c0_i32_0 = arith.constant 0 : i32
    %c0_i32_1 = arith.constant 0 : i32
    return %c0_i32, %c0_i32_0 : i32, i32
  }
  func.func @transform_1(%arg0: i32) -> (i32, i32) {
    %c0_i32 = arith.constant 0 : i32
    %c0_i32_0 = arith.constant 0 : i32
    %c0_i32_1 = arith.constant 0 : i32
    return %c0_i32, %c0_i32_0 : i32, i32
  }
  func.func @transform_2(%arg0: i32) -> (i32, i32) {
    %c0_i32 = arith.constant 0 : i32
    %c0_i32_0 = arith.constant 0 : i32
    %c0_i32_1 = arith.constant 0 : i32
    return %c0_i32, %c0_i32_0 : i32, i32
  }
  func.func @transform_3(%arg0: i32) -> (i32, i32) {
    %c0_i32 = arith.constant 0 : i32
    %c0_i32_0 = arith.constant 0 : i32
    %c0_i32_1 = arith.constant 0 : i32
    return %c0_i32, %c0_i32_0 : i32, i32
  }
  func.func @transform_4(%arg0: i32) -> (i32, i32) {
    %c0_i32 = arith.constant 0 : i32
    %c0_i32_0 = arith.constant 0 : i32
    return %c0_i32, %arg0 : i32, i32
  }
  func.func @transform_5(%arg0: i32) -> (i32, i32) {
    %c0_i32 = arith.constant 0 : i32
    %c0_i32_0 = arith.constant 0 : i32
    return %c0_i32, %arg0 : i32, i32
  }
  func.func @transform_6(%arg0: i32) -> (i32, i32) {
    %c0_i32 = arith.constant 0 : i32
    %c0_i32_0 = arith.constant 0 : i32
    return %c0_i32, %arg0 : i32, i32
  }
  func.func @transform_7(%arg0: i32) -> (i32, i32) {
    %c0_i32 = arith.constant 0 : i32
    %c0_i32_0 = arith.constant 0 : i32
    %c0_i32_1 = arith.constant 0 : i32
    return %c0_i32, %c0_i32_0 : i32, i32
  }
  func.func @transform_8(%arg0: i32) -> (i32, i32) {
    %c0_i32 = arith.constant 0 : i32
    %c0_i32_0 = arith.constant 0 : i32
    %c0_i32_1 = arith.constant 0 : i32
    return %c0_i32, %c0_i32_0 : i32, i32
  }
}

</mosaic_0001>

<bundles_post_ra>
// kernel: decoder_forward.1
= control target key start
LH: loop header
LB: loop body
LE: loop exit
PB: predicated region body
PF: predicated region fallthrough
CT: control target
= control target key end

     0   :  { %14 = vsyncpa [#allocation4], 0  ;;  %s1686_s0 = inlined_call_operand.vmem [shape: f32[8,160], index: 0, kind: input, shape index: {}]   ;;  %s1687_s1 = inlined_call_operand.vmem [shape: f32[8,128], index: 1, kind: input, shape index: {}]   ;;  %s1688_s2 = inlined_call_operand.hbm [shape: f32[160,512], index: 2, kind: input, shape index: {}]   ;;  %s1689_s3 = inlined_call_operand.vmem [shape: f32[1,512], index: 3, kind: input, shape index: {}]   ;;  %s1690_s4 = inlined_call_operand.hbm [shape: f32[128,256], index: 4, kind: input, shape index: {}]   ;;  %s1691_s5 = inlined_call_operand.vmem [shape: f32[1,256], index: 5, kind: input, shape index: {}]   ;;  %s1692_s6 = inlined_call_operand.hbm [shape: f32[8,256], index: 6, kind: output, shape index: {0}]   ;;  %s1693_s7 = inlined_call_operand.hbm [shape: f32[8,128], index: 7, kind: output, shape index: {1}]   ;;  %s1694_s8 = inlined_call_operand.hbm [shape: f32[8,128], index: 8, kind: output, shape index: {2}]  }
   0x1   :  { %15 = vsyncpa [#allocation7], 0 }
   0x2   :  { %17 = vsyncpa [#allocation7 + $0x1], 0 }
   0x3   :  { %18 = vsyncpa [#allocation5], 0 }
   0x4   :  { %20 = vsyncpa [#allocation5 + $0x1], 0 }
   0x5   :  { %21 = vsyncpa [#allocation10], 0  ;;  %s1393_s27 = smov 0   ;;  %s1395_s28 = smov 0  }
   0x6   :  { %s1397_s29 = smov 0   ;;  %s1399_s30 = smov 0  }
   0x7 LB: > { %1703 = sst [smem:[#allocation16_spill]] %s1329_s29  ;;  %s1414_s9 = sadd.s32 4294967295, %s1333_s30   ;;  %s1333_s30 = sphi %s1399_s30, %s1731_s30   ;;  %s1329_s29 = sphi %s1397_s29, %s1733_s29   ;;  %s1325_s28 = sphi %s1395_s28, %s1735_s28   ;;  %s1321_s27 = sphi %s1393_s27, %s1734_s27  }
   0x8   : > { %s873_s10 = sadd.s32 4294967294, %s1333_s30   ;;  %s1418_s11 = sadd.s32 1, %s1333_s30  }
   0x9   : > { %1704 = sst [smem:[#allocation17_spill]] %s1418_s11  ;;  %s118_s12 = sadd.s32 1, %s1329_s29 }
   0xa   : > { %s115_s13 = ssub.s32 %s1333_s30, %s1418_s11  ;;  %p125_p0 = scmp.ne.s32.totalorder %s1329_s29, %s1325_s28 }
   0xb   : > { %p116_p1 = scmp.eq.s32.totalorder %s115_s13, 0  ;;  %p126_p2 = scmp.eq.s32.totalorder %s1333_s30, 0 }
   0xc   : > { %p131_p3 = scmp.ne.s32.totalorder %s1325_s28, %s1321_s27  ;;  %p1696_p4 = scmp.eq.s32.totalorder %s1414_s9, 0 }
   0xd   : > { %s1430_s14 = scalar_select %p116_p1, %s1329_s29, %s118_s12  }
   0xe   : > { %p1432_p5 = por %p126_p2, %p125_p0  ;;  %p1438_p6 = por %p1696_p4, %p131_p3 }
   0xf   : > { %1705 = sst [smem:[#allocation18_spill]] %s1430_s14  ;;  %p1695_p7 = scmp.eq.s32.totalorder %s1414_s9, 1 }
  0x10   : > { %s1706_s15 = scalar_select %p1432_p5, 1, 0 }
  0x11   : > { %s1707_s16 = scalar_select %p1438_p6, 1, 0 }
  0x12   : > { %p187_p8 = scmp.eq.s32.totalorder %s873_s10, 1  ;;  %p874_p9 = scmp.ge.s32.totalorder %s1333_s30, 1 }
  0x13   : > { %p236_p10 = scmp.lt.s32.totalorder %s1333_s30, 3  ;;  %p1447_p11 = por %p1695_p7, %p125_p0 }
  0x14   : > { %p1451_p12 = por %p187_p8, %p131_p3  ;;  %s1335_s20 = smov [#allocation3]  }
  0x15   : > { %s1708_s17 = scalar_select %p1447_p11, 1, 0 }
  0x16   : > { %s1709_s18 = scalar_select %p1451_p12, 1, 0 }
  0x17   : > { %p1455_p13 = pnand %p874_p9, %p236_p10  ;;  %s254_s21 = sshll.u32 %s1335_s20, 4  ;;  %s255_s21 = int_to_ptr.vmem [resolvable:$true] %s254_s21 }
  0x18   : > { %s271_s23 = sand.u32 1, %s1329_s29   ;;  %s1149_s26 = scalar_lea.hbm %s1688_s2, 10240 }
  0x19   : > { %s1710_s19 = scalar_select %p1455_p13, 1, 0 }
  0x1a   : > { %p1070_p2 = pneg %p1455_p13  ;;  %p1150_p9 = scmp.ne.s32.totalorder %s1688_s2, %s1149_s26 }
  0x1c   : > { %p1464_p0 = pnand %p1070_p2, %p1696_p4  ;;  %p1156_p2 = scmp.lt.u32.totalorder %s1149_s26, %s1688_s2 }
  0x1e   : > { %p1151_p10 = pneg %p1464_p0 }
  0x20   : > { %p1152_p7 = pnand %p1151_p10, %p1150_p9 }
  0x22   : > { %p1153_p1 = pneg %p1152_p7 }
  0x24   : > { %p1158_p4 = pnand %p1156_p2, %p1153_p1 }
  0x26   : > { %1161 = shalt.err (!%p1158_p4)
}
  0x27   : > { %s1162_s14 = scalar_lea.vmem %s255_s21, 10240  ;;  %p1170_p11 = scmp.lt.s32.totalorder %s255_s21, %s255_s21 }
  0x28   : > { %p1163_p3 = scmp.ne.s32.totalorder %s255_s21, %s1162_s14  ;;  %p1171_p6 = scmp.lt.s32.totalorder %s1162_s14, %s1162_s14 }
  0x2a   : > { %p1165_p8 = pnand %p1163_p3, %p1151_p10  ;;  %p1172_p13 = por %p1171_p6, %p1170_p11 }
  0x2c   : > { %p1166_p12 = pneg %p1165_p8 }
  0x2e   : > { %p1173_p5 = pnand %p1172_p13, %p1166_p12 }
  0x30   : > { %1176 = shalt.err (!%p1173_p5)
}
  0x31   : > { %s1336_s24 = smov 512   ;;  %s1337_s25 = smov 32  }
  0x32   : > { %1073 = dma.hbm_to_vmem [thread:$0]  (!%p1464_p0), %s1688_s2, 10240, %s255_s21, [#allocation4], %s1336_s24, %s1336_s24, %s1337_s25  }
  0x33   : > { %p1712_p4 = scmp.ne.s32.totalorder %s1706_s15, 0  ;;  %p1713_p7 = scmp.lt.s32.totalorder %s1333_s30, 2 }
  0x34   : > { %s877_s14 = sshll.u32 %s271_s23, 7  ;;  %s878_s13 = sshll.u32 %s1333_s30, 7 }
  0x35   : > { %p1491_p1 = pnand %p1713_p7, %p1712_p4  ;;  %s1499_s11 = scalar_lea.hbm %s1690_s4, %s878_s13 }
  0x36   : > { %s275_s21 = scalar_lea.vmem [#allocation6], %s877_s14  ;;  %s1503_s22 = scalar_lea.sflag [#allocation7], %s271_s23 }
  0x37   : > { %s281_s15 = sshll.u32 %s275_s21, 4  ;;  %s1177_s24 = scalar_lea.hbm %s1499_s11, 2048  ;;  %s1501_s15 = int_to_ptr.vmem [resolvable:$true] %s281_s15 }
  0x38   : > { %p1178_p5 = scmp.ne.s32.totalorder %s1499_s11, %s1177_s24  ;;  %p1179_p6 = pneg %p1491_p1 }
  0x39   : > { %s1182_s10 = scalar_lea.hbm %s1690_s4, 4096  ;;  %p1183_p13 = scmp.lt.u32.totalorder %s1499_s11, %s1690_s4 }
  0x3a   : > { %p1180_p11 = pnand %p1179_p6, %p1178_p5  ;;  %p1184_p0 = scmp.lt.u32.totalorder %s1182_s10, %s1177_s24 }
  0x3b   : > { %p1186_p8 = scmp.lt.u32.totalorder %s1177_s24, %s1499_s11 }
  0x3c   : > { %p1181_p12 = pneg %p1180_p11  ;;  %p1185_p3 = por %p1184_p0, %p1183_p13 }
  0x3e   : > { %p1187_p9 = por %p1186_p8, %p1185_p3 }
  0x40   : > { %p1188_p10 = pnand %p1187_p9, %p1181_p12 }
  0x42   : > { %1191 = shalt.err (!%p1188_p10)
}
  0x43   : > { %s1192_s23 = scalar_lea.vmem %s1501_s15, 2048  ;;  %s1338_s14 = smov [#allocation6]  }
  0x44   : > { %p1193_p2 = scmp.ne.s32.totalorder %s1501_s15, %s1192_s23  ;;  %s1197_s20 = sshll.u32 %s1338_s14, 4  ;;  %s1198_s20 = int_to_ptr.vmem [resolvable:$false] %s1197_s20 }
  0x45   : > { %s1199_s21 = scalar_lea.vmem %s1198_s20, 4096  ;;  %p1200_p5 = scmp.lt.s32.totalorder %s1501_s15, %s1198_s20 }
  0x46   : > { %p1195_p4 = pnand %p1193_p2, %p1179_p6  ;;  %p1201_p11 = scmp.lt.s32.totalorder %s1199_s21, %s1192_s23 }
  0x48   : > { %p1196_p7 = pneg %p1195_p4  ;;  %p1202_p13 = por %p1201_p11, %p1200_p5 }
  0x4a   : > { %p1203_p0 = pnand %p1202_p13, %p1196_p7 }
  0x4c   : > { %1206 = shalt.err (!%p1203_p0)
}
  0x4d   : > { %s1339_s24 = smov 256   ;;  %s1340_s29 = smov 128  }
  0x4e   : > { %s1341_s25 = smov 8   ;;  %p1715_p6 = scmp.ne.s32.totalorder %s1710_s19, 0 }
  0x4f   : > { %1077 = dma.hbm_to_vmem [thread:$0]  (!%p1491_p1), %s1499_s11, 2048, %s1501_s15, %s1503_s22, %s1339_s24, %s1340_s29, %s1341_s25  }
  0x50   : > { %299 = sbr.rel (%p1715_p6) target bundleno = 665 (0x299), region = 44  ;;  %p1716_p12 = scmp.eq.s32.totalorder (!%p1715_p6), %s1414_s9, 0 }
  0x57   : > { %1304 = dma.done.wait (%p1716_p12), [#allocation4], 10240   ;;  %p1717_p3 = pmov %p1716_p12 }
  0x58   : > { %s1538_s10 = sand.u32 1, %s1325_s28   ;;  %p1718_p1 = scmp.ne.s32.totalorder %s1707_s16, 0 }
  0x59   : > { %1306 = vsyncadd (%p1717_p3), [#allocation4], 4294957056  ;;  %s881_s26 = sshll.u32 %s1538_s10, 7  ;;  %s306_s13 = scalar_lea.sflag [#allocation7], %s1538_s10 }
  0x5a   : > { %s1542_s23 = scalar_lea.vmem [#allocation6], %s881_s26 }
  0x5b   : > { %1308 = dma.done.wait (%p1718_p1), %s306_s13, 2048  }
  0x5c   : > { %1310 = vsyncadd (%p1718_p1), %s306_s13, 4294965248  ;;  %s882_s11 = sshll.u32 %s1538_s10, 3  ;;  %p345_p8 = scmp.lt.s32.totalorder %s1414_s9, 1 }
  0x5d   : > { %s1557_s14 = scalar_lea.vmem [#allocation8], %s882_s11  ;;  %p1719_p9 = scmp.ne.s32.totalorder %s1414_s9, 0 }
  0x5e   : > { %s1551_s19 = scalar_select %p345_p8, %s1414_s9, 1 }
  0x5f   : > { %351 = sbr.rel (%p1719_p9) target bundleno = 398 (0x18e), region = 56  ;;  %v355_v0 = vld [vmem:[#allocation3 + $0x8] sm:$0xff] (!%p1719_p9)  ;;  %v354_v2 = vld [vmem:[#allocation3] sm:$0xff] (!%p1719_p9)  ;;  %v357_v18 = vld [vmem:[#allocation3 + $0x18] sm:$0xff] (!%p1719_p9)  ;;  %vm456_vm0 = vcmask (!%p1719_p9), 261120  }
  0x60   : > { %s347_s22 = scalar_lea.vmem %s1691_s5, %s1551_s19  ;;  %v359_v1 = vld [vmem:[#allocation3 + $0x28] sm:$0xff] (!%p1719_p9)  ;;  %v358_v4 = vld [vmem:[#allocation3 + $0x20] sm:$0xff] (!%p1719_p9)  ;;  %v361_v19 = vld [vmem:[#allocation3 + $0x38] sm:$0xff] (!%p1719_p9) }
  0x61   : > { %v950_v3 = vpack.c.bf16 (!%p1719_p9), %v359_v1, %v355_v0  ;;  %v363_v5 = vld [vmem:[#allocation3 + $0x48] sm:$0xff] (!%p1719_p9)  ;;  %v952_v7 = vpack.c.bf16 (!%p1719_p9), %v358_v4, %v354_v2  ;;  %v362_v9 = vld [vmem:[#allocation3 + $0x40] sm:$0xff] (!%p1719_p9)  ;;  %v990_v21 = vpack.c.bf16 (!%p1719_p9), %v361_v19, %v357_v18  ;;  %v356_v22 = vld [vmem:[#allocation3 + $0x10] sm:$0xff] (!%p1719_p9) }
  0x62   : > { %v367_v6 = vld [vmem:[#allocation3 + $0x68] sm:$0xff] (!%p1719_p9)  ;;  %v366_v10 = vld [vmem:[#allocation3 + $0x60] sm:$0xff] (!%p1719_p9)  ;;  %v360_v23 = vld [vmem:[#allocation3 + $0x30] sm:$0xff] (!%p1719_p9) }
  0x63   : > { %v954_v8 = vpack.c.bf16 (!%p1719_p9), %v367_v6, %v363_v5  ;;  %v371_v11 = vld [vmem:[#allocation3 + $0x88] sm:$0xff] (!%p1719_p9)  ;;  %951 = vmatprep.subr.bf16.mxu0 (!%p1719_p9), %v950_v3  ;;  %v956_v13 = vpack.c.bf16 (!%p1719_p9), %v366_v10, %v362_v9  ;;  %v370_v14 = vld [vmem:[#allocation3 + $0x80] sm:$0xff] (!%p1719_p9)  ;;  %v992_v24 = vpack.c.bf16 (!%p1719_p9), %v360_v23, %v356_v22  ;;  %991 = vmatprep.subr.bf16.mxu1 (!%p1719_p9), %v990_v21  ;;  %v365_v26 = vld [vmem:[#allocation3 + $0x58] sm:$0xff] (!%p1719_p9) }
  0x64   : > { %v375_v12 = vld [vmem:[#allocation3 + $0xa8] sm:$0xff] (!%p1719_p9)  ;;  %953 = vmatpush1.bf16.msra.mxu0 (!%p1719_p9), %v952_v7  ;;  %v374_v15 = vld [vmem:[#allocation3 + $0xa0] sm:$0xff] (!%p1719_p9)  ;;  %v369_v27 = vld [vmem:[#allocation3 + $0x78] sm:$0xff] (!%p1719_p9) }
  0x65   : > { %955 = vmatprep.subr.bf16.mxu0 (!%p1719_p9), %v954_v8  ;;  %v958_v16 = vpack.c.bf16 (!%p1719_p9), %v375_v12, %v371_v11  ;;  %v379_v17 = vld [vmem:[#allocation3 + $0xc8] sm:$0xff] (!%p1719_p9)  ;;  %v960_v25 = vpack.c.bf16 (!%p1719_p9), %v374_v15, %v370_v14  ;;  %v364_v28 = vld [vmem:[#allocation3 + $0x50] sm:$0xff] (!%p1719_p9)  ;;  %v378_v30 = vld [vmem:[#allocation3 + $0xc0] sm:$0xff] (!%p1719_p9)  ;;  %993 = vmatpush1.bf16.msra.mxu1 (!%p1719_p9), %v992_v24  ;;  %v994_v32 = vpack.c.bf16 (!%p1719_p9), %v369_v27, %v365_v26 }
  0x66   : > { %v383_v20 = vld [vmem:[#allocation3 + $0xe8] sm:$0xff]  ;;  %v382_v31 = vld [vmem:[#allocation3 + $0xe0] sm:$0xff]  ;;  %v368_v33 = vld [vmem:[#allocation3 + $0x70] sm:$0xff] }
  0x67   : > { %v962_v29 = vpack.c.bf16 %v383_v20, %v379_v17  ;;  %v387_v34 = vld [vmem:[#allocation3 + $0x108] sm:$0xff]  ;;  %v996_v36 = vpack.c.bf16 %v368_v33, %v364_v28  ;;  %v373_v37 = vld [vmem:[#allocation3 + $0x98] sm:$0xff]  ;;  %995 = vmatprep.subr.bf16.mxu1 %v994_v32  ;;  %v372_v39 = vld [vmem:[#allocation3 + $0x90] sm:$0xff]  ;;  %v964_v41 = vpack.c.bf16 %v382_v31, %v378_v30 }
  0x68   : > { %957 = vmatpush1.bf16.msra.mxu0 %v956_v13  ;;  %v391_v35 = vld [vmem:[#allocation3 + $0x128] sm:$0xff]  ;;  %v377_v38 = vld [vmem:[#allocation3 + $0xb8] sm:$0xff]  ;;  %v376_v40 = vld [vmem:[#allocation3 + $0xb0] sm:$0xff] }
  0x69   : > { %959 = vmatprep.subr.bf16.mxu0 %v958_v16  ;;  %v386_v42 = vld [vmem:[#allocation3 + $0x100] sm:$0xff]  ;;  %v998_v44 = vpack.c.bf16 %v377_v38, %v373_v37  ;;  %v966_v45 = vpack.c.bf16 %v391_v35, %v387_v34  ;;  %997 = vmatpush1.bf16.msra.mxu1 %v996_v36  ;;  %v395_v46 = vld [vmem:[#allocation3 + $0x148] sm:$0xff]  ;;  %v1000_v47 = vpack.c.bf16 %v376_v40, %v372_v39  ;;  %v381_v48 = vld [vmem:[#allocation3 + $0xd8] sm:$0xff] }
  0x6a   : > { %v390_v43 = vld [vmem:[#allocation3 + $0x120] sm:$0xff]  ;;  %v385_v49 = vld [vmem:[#allocation3 + $0xf8] sm:$0xff]  ;;  %v399_v50 = vld [vmem:[#allocation3 + $0x168] sm:$0xff] }
  0x6b   : > { %999 = vmatprep.subr.bf16.mxu1 %v998_v44  ;;  %v1002_v51 = vpack.c.bf16 %v385_v49, %v381_v48  ;;  %v380_v52 = vld [vmem:[#allocation3 + $0xd0] sm:$0xff]  ;;  %v968_v54 = vpack.c.bf16 %v390_v43, %v386_v42  ;;  %v389_v55 = vld [vmem:[#allocation3 + $0x118] sm:$0xff]  ;;  %v970_v57 = vpack.c.bf16 %v399_v50, %v395_v46  ;;  %v394_v58 = vld [vmem:[#allocation3 + $0x140] sm:$0xff] }
  0x6c   : > { %961 = vmatpush1.bf16.msra.mxu0 %v960_v25  ;;  %v384_v53 = vld [vmem:[#allocation3 + $0xf0] sm:$0xff]  ;;  %v393_v56 = vld [vmem:[#allocation3 + $0x138] sm:$0xff]  ;;  %v398_v59 = vld [vmem:[#allocation3 + $0x160] sm:$0xff] }
  0x6d   : > { %963 = vmatprep.subr.bf16.mxu0 %v962_v29  ;;  %1001 = vmatpush1.bf16.msra.mxu1 %v1000_v47  ;;  %v403_v60 = vld [vmem:[#allocation3 + $0x188] sm:$0xff]  ;;  %v1004_v61 = vpack.c.bf16 %v384_v53, %v380_v52  ;;  %v1006_v63 = vpack.c.bf16 %v393_v56, %v389_v55  ;;  %v388_v0 = vld [vmem:[#allocation3 + $0x110] sm:$0xff]  ;;  %v397_v2 = vld [vmem:[#allocation3 + $0x158] sm:$0xff]  ;;  %v972_v4 = vpack.c.bf16 %v398_v59, %v394_v58  ;;  %v436_v58 = vlaneseq }
  0x6e   : > { %v407_v62 = vld [vmem:[#allocation3 + $0x1a8] sm:$0xff]  ;;  %1003 = vmatprep.subr.bf16.mxu1 %v1002_v51  ;;  %v392_v1 = vld [vmem:[#allocation3 + $0x130] sm:$0xff]  ;;  %v401_v3 = vld [vmem:[#allocation3 + $0x178] sm:$0xff] }
  0x6f   : > { %v402_v5 = vld [vmem:[#allocation3 + $0x180] sm:$0xff]  ;;  %v974_v6 = vpack.c.bf16 %v407_v62, %v403_v60  ;;  %v411_v8 = vld [vmem:[#allocation3 + $0x1c8] sm:$0xff]  ;;  %v1008_v10 = vpack.c.bf16 %v392_v1, %v388_v0  ;;  %v1010_v11 = vpack.c.bf16 %v401_v3, %v397_v2  ;;  %v396_v12 = vld [vmem:[#allocation3 + $0x150] sm:$0xff]  ;;  %v437_v59 = vshrl.u32 %v436_v58, 7 }
  0x70   : > { %965 = vmatpush1.bf16.msra.mxu0 %v964_v41  ;;  %v406_v7 = vld [vmem:[#allocation3 + $0x1a0] sm:$0xff]  ;;  %v415_v9 = vld [vmem:[#allocation3 + $0x1e8] sm:$0xff]  ;;  %v400_v13 = vld [vmem:[#allocation3 + $0x170] sm:$0xff] }
  0x71   : > { %967 = vmatprep.subr.bf16.mxu0 %v966_v45  ;;  %1005 = vmatpush1.bf16.msra.mxu1 %v1004_v61  ;;  %v353_v14 = vld [vmem:[%s1686_s0 + $0x8] sm:$0xff]  ;;  %v405_v15 = vld [vmem:[#allocation3 + $0x198] sm:$0xff]  ;;  %v976_v17 = vpack.c.bf16 %v406_v7, %v402_v5  ;;  %v978_v18 = vpack.c.bf16 %v415_v9, %v411_v8  ;;  %v419_v21 = vld [vmem:[#allocation3 + $0x208] sm:$0xff]  ;;  %v1012_v22 = vpack.c.bf16 %v400_v13, %v396_v12  ;;  %v438_v60 = vsub.s32 0, %v437_v59 }
  0x72   : > { %1007 = vmatprep.subr.bf16.mxu1 %v1006_v63  ;;  %v409_v16 = vld [vmem:[#allocation3 + $0x1b8] sm:$0xff]  ;;  %884 = vmatprep.mubr.msk.f32.mxu0 %vm456_vm0, %v353_v14  ;;  %v410_v19 = vld [vmem:[#allocation3 + $0x1c0] sm:$0xff]  ;;  %v423_v23 = vld [vmem:[#allocation3 + $0x228] sm:$0xff]  ;;  %v442_v62 = vsub.s32 1, %v437_v59  ;;  %v450_v1 = vsub.s32 3, %v437_v59  ;;  %v446_v9 = vsub.s32 2, %v437_v59 }
  0x73   : > { %885 = vmatprep.mubr.msk.f32.mxu1 %vm456_vm0, %v353_v14  ;;  %v414_v20 = vld [vmem:[#allocation3 + $0x1e0] sm:$0xff]  ;;  %v1014_v24 = vpack.c.bf16 %v409_v16, %v405_v15  ;;  %v404_v25 = vld [vmem:[#allocation3 + $0x190] sm:$0xff]  ;;  %v413_v27 = vld [vmem:[#allocation3 + $0x1d8] sm:$0xff]  ;;  %v982_v30 = vpack.c.bf16 %v423_v23, %v419_v21 }
  0x74   : > { %969 = vmatpush1.bf16.msra.mxu0 %v968_v54  ;;  %v408_v26 = vld [vmem:[#allocation3 + $0x1b0] sm:$0xff]  ;;  %v417_v28 = vld [vmem:[#allocation3 + $0x1f8] sm:$0xff]  ;;  %v980_v29 = vpack.c.bf16 %v414_v20, %v410_v19  ;;  %v418_v31 = vld [vmem:[#allocation3 + $0x200] sm:$0xff] }
  0x75   : > { %971 = vmatprep.subr.bf16.mxu0 %v970_v57  ;;  %1009 = vmatpush1.bf16.msra.mxu1 %v1008_v10  ;;  %v422_v32 = vld [vmem:[#allocation3 + $0x220] sm:$0xff]  ;;  %v427_v33 = vld [vmem:[#allocation3 + $0x248] sm:$0xff]  ;;  %v1016_v34 = vpack.c.bf16 %v408_v26, %v404_v25  ;;  %v1018_v36 = vpack.c.bf16 %v417_v28, %v413_v27  ;;  %v412_v37 = vld [vmem:[#allocation3 + $0x1d0] sm:$0xff] }
  0x76   : > { %1011 = vmatprep.subr.bf16.mxu1 %v1010_v11  ;;  %v431_v35 = vld [vmem:[#allocation3 + $0x268] sm:$0xff]  ;;  %v416_v38 = vld [vmem:[#allocation3 + $0x1f0] sm:$0xff]  ;;  %v421_v39 = vld [vmem:[#allocation3 + $0x218] sm:$0xff]  ;;  %v984_v41 = vpack.c.bf16 %v422_v32, %v418_v31 }
  0x77   : > { %v425_v40 = vld [vmem:[#allocation3 + $0x238] sm:$0xff]  ;;  %v986_v42 = vpack.c.bf16 %v431_v35, %v427_v33  ;;  %v426_v43 = vld [vmem:[#allocation3 + $0x240] sm:$0xff]  ;;  %v1020_v45 = vpack.c.bf16 %v416_v38, %v412_v37  ;;  %v420_v47 = vld [vmem:[#allocation3 + $0x210] sm:$0xff] }
  0x78   : > { %973 = vmatpush1.bf16.msra.mxu0 %v972_v4  ;;  %v430_v44 = vld [vmem:[#allocation3 + $0x260] sm:$0xff]  ;;  %v1022_v46 = vpack.c.bf16 %v425_v40, %v421_v39  ;;  %v424_v48 = vld [vmem:[#allocation3 + $0x230] sm:$0xff]  ;;  %v429_v49 = vld [vmem:[#allocation3 + $0x258] sm:$0xff] }
  0x79   : > { %975 = vmatprep.subr.bf16.mxu0 %v974_v6  ;;  %1013 = vmatpush1.bf16.msra.mxu1 %v1012_v22  ;;  %v433_v50 = vld [vmem:[#allocation3 + $0x278] sm:$0xff]  ;;  %v988_v51 = vpack.c.bf16 %v430_v44, %v426_v43  ;;  %v1024_v52 = vpack.c.bf16 %v424_v48, %v420_v47  ;;  %v428_v54 = vld [vmem:[#allocation3 + $0x250] sm:$0xff] }
  0x7a   : > { %1015 = vmatprep.subr.bf16.mxu1 %v1014_v24  ;;  %v1026_v53 = vpack.c.bf16 %v433_v50, %v429_v49  ;;  %v432_v55 = vld [vmem:[#allocation3 + $0x270] sm:$0xff]  ;;  %v352_v56 = vld [vmem:[%s1686_s0] sm:$0xff] }
  0x7b   : > { %v1028_v57 = vpack.c.bf16 %v432_v55, %v428_v54  ;;  %v434_v61 = vld [vmem:[%s1689_s3] sm:$0xf] }
  0x7c   : > { %977 = vmatpush1.bf16.msra.mxu0 %v976_v17  ;;  %v439_v63 = vrot.slane %v434_v61, %v438_v60  ;;  %v443_v0 = vrot.slane %v434_v61, %v442_v62  ;;  %v451_v7 = vrot.slane %v434_v61, %v450_v1  ;;  %v447_v13 = vrot.slane %v434_v61, %v446_v9  ;;  %v621_v22 = vld [vmem:[%s1687_s1] sm:$0xff] }
  0x7d   : > { %979 = vmatprep.subr.bf16.mxu0 %v978_v18  ;;  %1017 = vmatpush1.bf16.msra.mxu1 %v1016_v34 }
  0x7e   : > { %1019 = vmatprep.subr.bf16.mxu1 %v1018_v36 }
  0x80   : > { %981 = vmatpush1.bf16.msra.mxu0 %v980_v29 }
  0x81   : > { %983 = vmatprep.subr.bf16.mxu0 %v982_v30  ;;  %1021 = vmatpush1.bf16.msra.mxu1 %v1020_v45 }
  0x82   : > { %1023 = vmatprep.subr.bf16.mxu1 %v1022_v46 }
  0x84   : > { %985 = vmatpush1.bf16.msra.mxu0 %v984_v41 }
  0x85   : > { %987 = vmatprep.subr.bf16.mxu0 %v986_v42  ;;  %1025 = vmatpush1.bf16.msra.mxu1 %v1024_v52 }
  0x86   : > { %1027 = vmatprep.subr.bf16.mxu1 %v1026_v53 }
  0x88   : > { %989 = vmatpush1.bf16.msra.mxu0 %v988_v51 }
  0x89   : > { %1029 = vmatpush1.bf16.msra.mxu1 %v1028_v57 }
  0x8b   : > { %525 = vmatmul.mubr.f32.vlgmr.msra.gmra.mrb[0].mxu0 %v352_v56 }
  0x8c   : > { %596 = vmatmul.mubr.f32.vlgmr.msra.gmra.mrb[0].mxu1 %v352_v56 }
 0x15e   : > { %v526_v2 = vpop.f32.mrb[0].mxu0 }
 0x15f   : > { %v527_v3 = vadd.f32 %v526_v2, %v439_v63  ;;  %v528_v4 = vpop.f32.mrb[1].mxu0  ;;  %v597_v10 = vpop.f32.mrb[0].mxu1 }
 0x160   : > { %v529_v5 = vadd.f32 %v528_v4, %v443_v0  ;;  %v599_v11 = vpop.f32.mrb[1].mxu1  ;;  %v598_v15 = vadd.f32 %v597_v10, %v447_v13 }
 0x161   : > { %v886_v6 = vmul.f32 -1.442695, %v527_v3  ;;  %v600_v12 = vadd.f32 %v599_v11, %v451_v7 }
 0x162   : > { %v887_v8 = vmul.f32 -1.442695, %v529_v5 }
 0x163   : > { %1133 = vpow2.f32 %v886_v6  ;;  %v888_v14 = vmul.f32 -1.442695, %v600_v12 }
 0x164   : > { %1135 = vpow2.f32 %v887_v8 }
 0x165   : > { %1137 = vpow2.f32 %v888_v14 }
 0x166   : > { %1139 = vtanh.f32 %v598_v15 }
 0x16d   : > { %v1134_v16 = vpop.eup %1133 }
 0x16e   : > { %v1136_v17 = vpop.eup %1135  ;;  %v605_v18 = vadd.f32 1.0, %v1134_v16 }
 0x16f   : > { %v611_v19 = vadd.f32 1.0, %v1136_v17  ;;  %v1138_v20 = vpop.eup %1137 }
 0x170   : > { %1141 = vrcp.f32 %v605_v18  ;;  %v1140_v21 = vpop.eup %1139  ;;  %v618_v24 = vadd.f32 1.0, %v1138_v20 }
 0x171   : > { %1143 = vrcp.f32 %v611_v19 }
 0x172   : > { %1145 = vrcp.f32 %v618_v24 }
 0x17a   : > { %v1142_v23 = vpop.eup %1141 }
 0x17b   : > { %v1144_v25 = vpop.eup %1143  ;;  %v623_v26 = vmul.f32 %v1142_v23, %v1140_v21 }
 0x17c   : > { %v622_v27 = vmul.f32 %v1144_v25, %v621_v22  ;;  %v1146_v29 = vpop.eup %1145 }
 0x17e   : > { %v624_v28 = vadd.f32 %v623_v26, %v622_v27 }
 0x180   : > { %1147 = vtanh.f32 %v624_v28  ;;  %629 = vst [vmem:[#allocation11] sm:$0xff] %v624_v28 }
 0x18a   : > { %v1148_v30 = vpop.eup %1147 }
 0x18b   : > { %v626_v31 = vmul.f32 %v1148_v30, %v1146_v29 }
 0x18d   : > { %627 = vst [vmem:[#allocation2] sm:$0xff] %v626_v31  ;;  %628 = vst [vmem:[#allocation9] sm:$0xff] %v626_v31 }
 0x18e PF: > { %v631_v32 = vld [vmem:[%s1542_s23] sm:$0xff]  ;;  %v632_v33 = vld [vmem:[%s1542_s23 + $0x8] sm:$0xff]  ;;  %v633_v34 = vld [vmem:[%s1542_s23 + $0x10] sm:$0xff]  ;;  %v1342_v35 = vmov 0.0|0.0   ;;  %vm1343_vm1 = vmmov 0   ;;  %v1344_v38 = vmov 0.0  }
 0x18f   : > { %1030 = vmatprep.subr.bf16.mxu0 %v1342_v35  ;;  %v1031_v36 = vpack.c.bf16 %v632_v33, %v631_v32  ;;  %v634_v37 = vld [vmem:[%s1542_s23 + $0x18] sm:$0xff]  ;;  %947 = vmatprep.mubr.msk.f32.mxu0 %vm1343_vm1, %v1344_v38  ;;  %v635_v40 = vld [vmem:[%s1542_s23 + $0x20] sm:$0xff]  ;;  %v636_v41 = vld [vmem:[%s1542_s23 + $0x28] sm:$0xff]  ;;  %s1345_s11 = smov [#allocation9]   ;;  %p1720_p2 = scmp.eq.s32.totalorder %s1414_s9, 1 }
 0x190   : > { %v1034_v39 = vpack.c.bf16 %v634_v37, %v633_v34  ;;  %v1037_v42 = vpack.c.bf16 %v636_v41, %v635_v40  ;;  %v637_v43 = vld [vmem:[%s1542_s23 + $0x30] sm:$0xff]  ;;  %v638_v44 = vld [vmem:[%s1542_s23 + $0x38] sm:$0xff]  ;;  %v639_v46 = vld [vmem:[%s1542_s23 + $0x40] sm:$0xff]  ;;  %s750_s12 = sshll.u32 %s1345_s11, 4  ;;  %s751_s12 = int_to_ptr.vmem [resolvable:$true] %s750_s12 }
 0x191   : > { %1032 = vmatpush3.bf16.msra.mxu0 %v1031_v36  ;;  %v1040_v45 = vpack.c.bf16 %v638_v44, %v637_v43  ;;  %v640_v47 = vld [vmem:[%s1542_s23 + $0x48] sm:$0xff]  ;;  %v641_v49 = vld [vmem:[%s1542_s23 + $0x50] sm:$0xff]  ;;  %v642_v50 = vld [vmem:[%s1542_s23 + $0x58] sm:$0xff]  ;;  %s1207_s15 = scalar_lea.vmem %s751_s12, 128  ;;  %p1214_p5 = scmp.lt.s32.totalorder %s751_s12, %s751_s12 }
 0x192   : > { %1033 = vmatprep.subr.bf16.mxu0 %v1342_v35  ;;  %v1043_v48 = vpack.c.bf16 %v640_v47, %v639_v46  ;;  %v1046_v51 = vpack.c.bf16 %v642_v50, %v641_v49  ;;  %v643_v52 = vld [vmem:[%s1542_s23 + $0x60] sm:$0xff]  ;;  %v644_v53 = vld [vmem:[%s1542_s23 + $0x68] sm:$0xff]  ;;  %v645_v55 = vld [vmem:[%s1542_s23 + $0x70] sm:$0xff]  ;;  %p1208_p10 = scmp.ne.s32.totalorder %s751_s12, %s1207_s15  ;;  %p1215_p11 = scmp.lt.s32.totalorder %s1207_s15, %s1207_s15 }
 0x193   : > { %v1049_v54 = vpack.c.bf16 %v644_v53, %v643_v52  ;;  %v646_v56 = vld [vmem:[%s1542_s23 + $0x78] sm:$0xff] }
 0x194   : > { %v1052_v57 = vpack.c.bf16 %v646_v56, %v645_v55  ;;  %v630_v58 = vld [vmem:[#allocation2] sm:$0xff]  ;;  %p1209_p4 = pnand %p1208_p10, %p1720_p2  ;;  %p1216_p13 = por %p1215_p11, %p1214_p5 }
 0x195   : > { %1035 = vmatpush3.bf16.msra.mxu0 %v1034_v39 }
 0x196   : > { %1036 = vmatprep.subr.bf16.mxu0 %v1342_v35  ;;  %p1210_p7 = pneg %p1209_p4 }
 0x198   : > { %p1217_p0 = pnand %p1216_p13, %p1210_p7 }
 0x199   : > { %1038 = vmatpush3.bf16.msra.mxu0 %v1037_v42 }
 0x19a   : > { %1039 = vmatprep.subr.bf16.mxu0 %v1342_v35 }
 0x19d   : > { %1041 = vmatpush3.bf16.msra.mxu0 %v1040_v45 }
 0x19e   : > { %1042 = vmatprep.subr.bf16.mxu0 %v1342_v35 }
 0x1a1   : > { %1044 = vmatpush3.bf16.msra.mxu0 %v1043_v48 }
 0x1a2   : > { %1045 = vmatprep.subr.bf16.mxu0 %v1342_v35 }
 0x1a5   : > { %1047 = vmatpush3.bf16.msra.mxu0 %v1046_v51 }
 0x1a6   : > { %1048 = vmatprep.subr.bf16.mxu0 %v1342_v35 }
 0x1a9   : > { %1050 = vmatpush3.bf16.msra.mxu0 %v1049_v54 }
 0x1aa   : > { %1051 = vmatprep.subr.bf16.mxu0 %v1342_v35 }
 0x1ad   : > { %1053 = vmatpush3.bf16.msra.mxu0 %v1052_v57 }
 0x1b0   : > { %948 = vmatmul.mubr.f32.vlgmr.msra.gmra.mrb[0].mxu0 %v630_v58 }
 0x1b1   : > { %1220 = shalt.err (!%p1217_p0)
}
 0x1b2   : > { %s1221_s20 = scalar_lea.hbm %s1693_s7, 128  ;;  %p1721_p12 = pmov %p1720_p2 }
 0x1b3   : > { %p1222_p6 = scmp.ne.s32.totalorder %s1693_s7, %s1221_s20  ;;  %p1227_p8 = scmp.lt.u32.totalorder %s1221_s20, %s1693_s7 }
 0x1b5   : > { %p1223_p3 = pnand %p1222_p6, %p1721_p12 }
 0x1b7   : > { %p1224_p1 = pneg %p1223_p3 }
 0x1b9   : > { %p1229_p9 = pnand %p1227_p8, %p1224_p1 }
 0x1bb   : > { %1232 = shalt.err (!%p1229_p9)
}
 0x1bc   : > { %p1722_p10 = pmov %p1720_p2  ;;  %s1346_s11 = smov [#allocation11]  }
 0x1bd   : > { %s761_s15 = sshll.u32 %s1346_s11, 4  ;;  %s762_s15 = int_to_ptr.vmem [resolvable:$true] %s761_s15 }
 0x1be   : > { %1062 = dma.vmem_to_hbm [thread:$0]  (%p1722_p10), %s751_s12, 128, %s1693_s7, [#allocation10]  }
 0x1bf   : > { %s1233_s23 = scalar_lea.vmem %s762_s15, 128  ;;  %p1723_p4 = pmov %p1722_p10 }
 0x1c0   : > { %p1234_p2 = scmp.ne.s32.totalorder %s762_s15, %s1233_s23  ;;  %p1240_p11 = scmp.lt.s32.totalorder %s762_s15, %s762_s15 }
 0x1c1   : > { %p1241_p13 = scmp.lt.s32.totalorder %s1233_s23, %s1233_s23 }
 0x1c2   : > { %p1235_p7 = pnand %p1234_p2, %p1723_p4 }
 0x1c3   : > { %p1242_p0 = por %p1241_p13, %p1240_p11 }
 0x1c4   : > { %p1236_p5 = pneg %p1235_p7 }
 0x1c6   : > { %p1243_p6 = pnand %p1242_p0, %p1236_p5 }
 0x1c8   : > { %1246 = shalt.err (!%p1243_p6)
}
 0x1c9   : > { %s1247_s21 = scalar_lea.hbm %s1694_s8, 128  ;;  %p1724_p3 = pmov %p1723_p4 }
 0x1ca   : > { %p1248_p12 = scmp.ne.s32.totalorder %s1694_s8, %s1247_s21  ;;  %p1253_p9 = scmp.lt.u32.totalorder %s1247_s21, %s1694_s8 }
 0x1cc   : > { %p1249_p1 = pnand %p1248_p12, %p1724_p3 }
 0x1ce   : > { %p1250_p8 = pneg %p1249_p1 }
 0x1d0   : > { %p1255_p10 = pnand %p1253_p9, %p1250_p8 }
 0x1d2   : > { %1258 = shalt.err (!%p1255_p10)
}
 0x1d3   : > { %p1725_p2 = pmov %p1724_p3  ;;  %v889_v59 = vld [vmem:[%s347_s22] ss:$0 sm:$0xff]  ;;  %s891_s16 = sshll.u32 %s1414_s9, 7 }
 0x1d4   : > { %s739_s20 = sshll.u32 %s1557_s14, 4  ;;  %s1637_s12 = scalar_lea.hbm %s1692_s6, %s891_s16  ;;  %s1639_s20 = int_to_ptr.vmem [resolvable:$true] %s739_s20 }
 0x1d5   : > { %1064 = dma.vmem_to_hbm [thread:$0]  (%p1725_p2), %s762_s15, 128, %s1694_s8, [#allocation10]  }
 0x1d6   : > { %s726_s15 = scalar_lea.sflag [#allocation5], %s1538_s10  ;;  %s1259_s29 = scalar_lea.vmem %s1639_s20, 128 }
 0x1d7   : > { %p1260_p4 = scmp.ne.s32.totalorder %s1639_s20, %s1259_s29  ;;  %p1726_p7 = scmp.ne.s32.totalorder %s1708_s17, 0 }
 0x1d8   : > { %s1347_s19 = smov [#allocation8]  }
 0x1d9   : > { %p1261_p5 = pnand %p1260_p4, %p1726_p7  ;;  %s1263_s22 = sshll.u32 %s1347_s19, 4  ;;  %s1264_s22 = int_to_ptr.vmem [resolvable:$false] %s1263_s22 }
 0x1da   : > { %s1265_s25 = scalar_lea.vmem %s1264_s22, 256  ;;  %p1266_p13 = scmp.lt.s32.totalorder %s1639_s20, %s1264_s22 }
 0x1db   : > { %p1262_p11 = pneg %p1261_p5  ;;  %p1267_p0 = scmp.lt.s32.totalorder %s1265_s25, %s1259_s29 }
 0x1dd   : > { %p1268_p6 = por %p1267_p0, %p1266_p13 }
 0x1df   : > { %p1269_p12 = pnand %p1268_p6, %p1262_p11 }
 0x283   : > { %v720_v60 = vpop.f32.mrb[0].mxu0 }
 0x284   : > { %v721_v61 = vadd.f32 %v889_v59, %v720_v60  ;;  %v949_v62 = vpop.f32.mrb[1].mxu0 }
 0x286   : > { %724 = vst [vmem:[%s1557_s14] sm:$0xff] %v721_v61 }
 0x287   : > { %1272 = shalt.err (!%p1269_p12)
}
 0x288   : > { %s1273_s10 = scalar_lea.hbm %s1637_s12, 128  ;;  %s1277_s13 = scalar_lea.hbm %s1692_s6, 256 }
 0x289   : > { %p1274_p3 = scmp.ne.s32.totalorder %s1637_s12, %s1273_s10  ;;  %p1278_p9 = scmp.lt.u32.totalorder %s1637_s12, %s1692_s6 }
 0x28a   : > { %p1279_p10 = scmp.lt.u32.totalorder %s1277_s13, %s1273_s10  ;;  %p1281_p4 = scmp.lt.u32.totalorder %s1273_s10, %s1637_s12 }
 0x28b   : > { %p1275_p1 = pnand %p1274_p3, %p1726_p7 }
 0x28c   : > { %p1280_p2 = por %p1279_p10, %p1278_p9 }
 0x28d   : > { %p1276_p8 = pneg %p1275_p1 }
 0x28e   : > { %p1282_p5 = por %p1281_p4, %p1280_p2 }
 0x290   : > { %p1283_p11 = pnand %p1282_p5, %p1276_p8 }
 0x292   : > { %1286 = shalt.err (!%p1283_p11)
}
 0x293   : > { %1060 = dma.vmem_to_hbm [thread:$0]  (%p1726_p7), %s1639_s20, 128, %s1637_s12, %s726_s15  }
 0x294   : > { %p1727_p13 = scmp.eq.s32.totalorder %s1414_s9, 1 }
 0x296   : > { %1312 = dma.done.wait (%p1727_p13), [#allocation10], 256   ;;  %p1728_p0 = pmov %p1727_p13 }
 0x298   : > { %1314 = vsyncadd (%p1728_p0), [#allocation10], 4294967040 }
 0x299 PF: > { %s781_s16 = sand.u32 1, %s1321_s27   ;;  %p1729_p6 = scmp.ne.s32.totalorder %s1709_s18, 0 }
 0x29a   : > { %p1730_p12 = scmp.ge.s32.totalorder %s1333_s30, 2  ;;  %s782_s21 = scalar_lea.sflag [#allocation5], %s781_s16 }
 0x29c   : > { %p1079_p3 = pnand %p1730_p12, %p1729_p6 }
 0x29e   : > { %1316 = dma.done.wait (!%p1079_p3), %s782_s21, 128  }
 0x29f   : > { %1318 = vsyncadd (!%p1079_p3), %s782_s21, 4294967168  ;;  %s1731_s30 = sld [smem:[#allocation17_spill]]  ;;  %s1732_s17 = sld [smem:[#allocation16_spill]] }
 0x2a0   : > { %s1733_s29 = sld [smem:[#allocation18_spill]]  ;;  %s1734_s27 = smov %s1325_s28 }
 0x2a5   : > { %p24_p7 = scmp.ge.s32.totalorder %s1731_s30, 4   ;;  %s1735_s28 = smov %s1732_s17 }
 0x2a7   :  { %26 = sbr.rel (!%p24_p7) target bundleno = 7 (0x7), region = 117 }
 0x2ae   :  { %787 = vsyncpa [#allocation4], 1 }
 0x2af   :  { %789 = vsyncpa [#allocation4 + $0x1], 1 }
 0x2b0   :  { %790 = vsyncpa [#allocation7], 1 }
 0x2b1   :  { %792 = vsyncpa [#allocation7 + $0x1], 1 }
 0x2b2   :  { %793 = vsyncpa [#allocation5], 1 }
 0x2b3   :  { %795 = vsyncpa [#allocation5 + $0x1], 1 }
 0x2b4   :  { %796 = vsyncpa [#allocation10], 1 }

</bundles_post_ra>
